<compile_context>
chip_gen: v6e
topology: v6e:2x2x1
jax: 0.10.0
libtpu: 0.0.40
codegen_flags: <defaults>
</compile_context>

<pallas_src>
import functools

import jax
import jax.numpy as jnp
from jax import lax
from jax.experimental import pallas as pl
from jax.experimental.pallas import tpu as pltpu

NUM_ACTIONS = 81  # act_fc4 output width


# ----------------------------- Pallas kernel ------------------------------ #
def _net_kernel(
    x_ref,      # (B*T, D)   batch-major flattened state (row = b*T + t)
    wih_ref,    # (D, 4H)    LSTM W_ih^T, g-gate columns pre-scaled x2
    whh_ref,    # (H, 4H)    LSTM W_hh^T, g-gate columns pre-scaled x2
    blstm_ref,  # (1, 4H)    b_ih + b_hh, g-gate lanes pre-scaled x2
    w1s_ref,    # (D, 256)   fused [act_fc1 | value_fc1] self-state cols, rows >= S zeroed
    w1h_ref,    # (H, 256)   fused [act_fc1 | value_fc1] hidden cols
    b1_ref,     # (1, 256)
    w4a_ref,    # (128, 128) act_fc4^T, output lanes 81:128 zero
    b4a_ref,    # (1, 128)   act_fc4 bias padded to 128 lanes
    vw4_ref,    # (1, 128)   value_fc4 weight row
    vb4_ref,    # (1, 1)     value_fc4 bias
    out_ref,    # (B, 128)   lanes 0:81 = softmax probs, lane 81 = value
    *,
    B: int,
    T: int,
    H: int,
):
    x = x_ref[...]

    # ---- LSTM: hoisted input projection, one MXU push for the whole seq ----
    gx = (
        jnp.dot(x, wih_ref[...], preferred_element_type=jnp.float32)
        + blstm_ref[...]
    )  # (B*T, 4H), bias folded in, g lanes already x2

    w_hh = whh_ref[...]
    h = jnp.zeros((B, H), jnp.float32)
    c = jnp.zeros((B, H), jnp.float32)

    # Fully unrolled recurrence (T static); only h @ W_hh is serial.
    for t in range(T):
        # Gather step-t rows (batch-major layout) with static sublane slices;
        # this is off the serial h-chain, the scheduler can pre-compute it.
        gx_t = jnp.concatenate(
            [gx[b * T + t:b * T + t + 1, :] for b in range(B)], axis=0
        )  # (B, 4H)
        gates = gx_t + jnp.dot(h, w_hh, preferred_element_type=jnp.float32)
        # One EUP pass: g lanes hold 2x the pre-activation, tanh(x)=2*sigmoid(2x)-1.
        sig = jax.nn.sigmoid(gates)
        i = sig[:, 0 * H:1 * H]
        f = sig[:, 1 * H:2 * H]
        g = 2.0 * sig[:, 2 * H:3 * H] - 1.0
        o = sig[:, 3 * H:4 * H]
        c = f * c + i * g
        h = o * jnp.tanh(c)

    # ---- fused actor/value heads ----
    # self_state = state[:, 0, :S]: take the full t==0 rows; w1s rows >= S are
    # zero so the extra input features contribute nothing (no lane slicing).
    x0 = jnp.concatenate([x[b * T:b * T + 1, :] for b in range(B)], axis=0)  # (B, D)

    h1 = (
        jnp.dot(x0, w1s_ref[...], preferred_element_type=jnp.float32)
        + jnp.dot(h, w1h_ref[...], preferred_element_type=jnp.float32)
        + b1_ref[...]
    )  # (B, 256): [act_fc1 out | value_fc1 out]
    h1 = jnp.maximum(h1, 0.0)  # ReLU

    # Actor head: one (B,128)x(128,128) MXU matmul.
    logits = (
        jnp.dot(h1[:, :128], w4a_ref[...], preferred_element_type=jnp.float32)
        + b4a_ref[...]
    )  # (B, 128), valid logits in lanes 0:81

    # Value head: VPU multiply + lane reduce (XLU slot), no dead MXU rows.
    v = jnp.sum(h1[:, 128:] * vw4_ref[...], axis=-1, keepdims=True) + vb4_ref[...]  # (B, 1)

    # ---- masked softmax over lanes 0:81 (exact division), value at lane 81 ----
    lane = lax.broadcasted_iota(jnp.int32, logits.shape, 1)
    valid = lane < NUM_ACTIONS
    masked = jnp.where(valid, logits, -jnp.inf)
    m = jnp.max(masked, axis=-1, keepdims=True)
    e = jnp.exp(masked - m)                      # invalid lanes -> exp(-inf) = 0
    probs = e / jnp.sum(e, axis=-1, keepdims=True)

    out_ref[...] = probs + jnp.where(lane == NUM_ACTIONS, v, 0.0)


# -------------------------- one-time weight prep ---------------------------- #
def prepare_params(params, *, input_dim, self_state_dim, lstm_hidden_dim):
    """Transpose / split / fuse / pre-scale weights once (not per forward)."""
    D, S, H = input_dim, self_state_dim, lstm_hidden_dim
    f32 = jnp.float32

    # Pre-scale the g-gate (lanes 2H:3H) by 2 so the kernel needs only one
    # sigmoid pass per step: tanh(x) = 2*sigmoid(2x) - 1.
    col = jnp.arange(4 * H)
    gscale = jnp.where((col >= 2 * H) & (col < 3 * H), 2.0, 1.0).astype(f32)

    w_ih_t = params["w_ih"].T.astype(f32) * gscale[None, :]     # (D, 4H)
    w_hh_t = params["w_hh"].T.astype(f32) * gscale[None, :]     # (H, 4H)
    b_lstm = ((params["b_ih"] + params["b_hh"]).astype(f32) * gscale)[None, :]

    aw1 = params["act_fc1_w"].astype(f32)                       # (128, S+H)
    vw1 = params["value_fc1_w"].astype(f32)                     # (128, S+H)
    # fused fc1: output lanes 0:128 actor, 128:256 value.
    # self-state columns padded to full input width D (rows >= S are zero).
    w1s = jnp.zeros((D, 256), f32).at[:S, :].set(
        jnp.concatenate([aw1[:, :S].T, vw1[:, :S].T], axis=1))
    w1h = jnp.concatenate([aw1[:, S:].T, vw1[:, S:].T], axis=1)  # (H, 256)
    b1 = jnp.concatenate(
        [params["act_fc1_b"], params["value_fc1_b"]], axis=0
    )[None, :].astype(f32)                                       # (1, 256)

    # actor fc4 only (value fc4 handled as a VPU reduce in the kernel)
    w4a = jnp.zeros((128, 128), f32).at[:, :NUM_ACTIONS].set(
        params["act_fc4_w"].T.astype(f32))
    b4a = jnp.zeros((1, 128), f32).at[0, :NUM_ACTIONS].set(
        params["act_fc4_b"].astype(f32))
    vw4 = params["value_fc4_w"].astype(f32).reshape(1, 128)
    vb4 = params["value_fc4_b"].astype(f32).reshape(1, 1)

    return (w_ih_t, w_hh_t, b_lstm, w1s, w1h, b1, w4a, b4a, vw4, vb4)


# ------------------------------- wrapper ----------------------------------- #
@functools.partial(jax.jit, static_argnames=("self_state_dim", "lstm_hidden_dim"))
def net_forward(state, prepped, *, self_state_dim, lstm_hidden_dim):
    """state: (B, T, D) float32. Returns (v (B,1), probs (B,81))."""
    del self_state_dim  # folded into the padded w1s weight
    if state.ndim == 2:
        state = state[None]  # matches the PyTorch dim==2 unsqueeze
    B, T, D = state.shape
    H = lstm_hidden_dim

    x_flat = state.reshape(B * T, D)  # free, no-copy reshape (batch-major)

    inputs = (x_flat,) + tuple(prepped)
    vmem = pl.BlockSpec(memory_space=pltpu.MemorySpace.VMEM)
    kernel = functools.partial(_net_kernel, B=B, T=T, H=H)

    out = pl.pallas_call(
        kernel,
        out_shape=jax.ShapeDtypeStruct((B, 128), jnp.float32),
        in_specs=[vmem] * len(inputs),
        out_specs=vmem,
    )(*inputs)

    probs = out[:, :NUM_ACTIONS]                  # (B, 81)
    v = out[:, NUM_ACTIONS:NUM_ACTIONS + 1]       # (B, 1)
    return v, probs


# --------------------------- parameter creation ----------------------------- #
def init_params(key, input_dim, self_state_dim, lstm_hidden_dim):
    D, S, H = input_dim, self_state_dim, lstm_hidden_dim
    ks = jax.random.split(key, 12)

    def u(k, shape, bound):
        return jax.random.uniform(k, shape, jnp.float32, -bound, bound)

    lstm_bound = 1.0 / jnp.sqrt(H)
    params = {
        "w_ih": u(ks[0], (4 * H, D), lstm_bound),
        "w_hh": u(ks[1], (4 * H, H), lstm_bound),
        "b_ih": u(ks[2], (4 * H,), lstm_bound),
        "b_hh": u(ks[3], (4 * H,), lstm_bound),
        "act_fc1_w": u(ks[4], (128, S + H), 1.0 / jnp.sqrt(S + H)),
        "act_fc1_b": u(ks[5], (128,), 1.0 / jnp.sqrt(S + H)),
        # act_fc4.weight.data.mul_(0.1)  (in-place -> applied)
        "act_fc4_w": u(ks[6], (NUM_ACTIONS, 128), 1.0 / jnp.sqrt(128)) * 0.1,
        "act_fc4_b": u(ks[7], (NUM_ACTIONS,), 1.0 / jnp.sqrt(128)),
        "value_fc1_w": u(ks[8], (128, S + H), 1.0 / jnp.sqrt(S + H)),
        "value_fc1_b": u(ks[9], (128,), 1.0 / jnp.sqrt(S + H)),
        # value_fc4.weight.data.mul(0.1) is NOT in-place in the reference -> no scaling
        "value_fc4_w": u(ks[10], (1, 128), 1.0 / jnp.sqrt(128)),
        "value_fc4_b": u(ks[11], (1,), 1.0 / jnp.sqrt(128)),
    }
    return params


# ------------------------------ pure-JAX ref -------------------------------- #
def net_forward_ref(state, params, *, self_state_dim, lstm_hidden_dim):
    S, H = self_state_dim, lstm_hidden_dim
    B, T, D = state.shape
    w_ih, w_hh = params["w_ih"], params["w_hh"]
    b = params["b_ih"] + params["b_hh"]

    def step(carry, x_t):
        h, c = carry
        g = x_t @ w_ih.T + h @ w_hh.T + b
        i = jax.nn.sigmoid(g[:, :H])
        f = jax.nn.sigmoid(g[:, H:2 * H])
        gg = jnp.tanh(g[:, 2 * H:3 * H])
        o = jax.nn.sigmoid(g[:, 3 * H:])
        c = f * c + i * gg
        h = o * jnp.tanh(c)
        return (h, c), None

    (hn, _), _ = lax.scan(step, (jnp.zeros((B, H)), jnp.zeros((B, H))),
                          jnp.transpose(state, (1, 0, 2)))
    joint = jnp.concatenate([state[:, 0, :S], hn], axis=1)
    act = jax.nn.relu(joint @ params["act_fc1_w"].T + params["act_fc1_b"])
    probs = jax.nn.softmax(act @ params["act_fc4_w"].T + params["act_fc4_b"], axis=-1)
    val = jax.nn.relu(joint @ params["value_fc1_w"].T + params["value_fc1_b"])
    v = val @ params["value_fc4_w"].T + params["value_fc4_b"]
    return v, probs


if __name__ == "__main__":
    B, T = 2, 8              # batch, sequence length (number of humans)
    input_dim = 16
    self_state_dim = 6
    lstm_hidden_dim = 32

    key = jax.random.PRNGKey(0)
    k_param, k_x = jax.random.split(key)
    params = init_params(k_param, input_dim, self_state_dim, lstm_hidden_dim)
    state = jax.random.normal(k_x, (B, T, input_dim), jnp.float32)

    # Weight preprocessing done ONCE (device-resident afterwards).
    prepped = jax.block_until_ready(
        prepare_params(params,
                       input_dim=input_dim,
                       self_state_dim=self_state_dim,
                       lstm_hidden_dim=lstm_hidden_dim))

    v, probs = net_forward(state, prepped,
                           self_state_dim=self_state_dim,
                           lstm_hidden_dim=lstm_hidden_dim)
    jax.block_until_ready((v, probs))

    v_ref, probs_ref = net_forward_ref(state, params,
                                       self_state_dim=self_state_dim,
                                       lstm_hidden_dim=lstm_hidden_dim)
    assert v.shape == (B, 1) and probs.shape == (B, NUM_ACTIONS)
    assert jnp.allclose(v, v_ref, atol=1e-4, rtol=1e-4)
    assert jnp.allclose(probs, probs_ref, atol=1e-4, rtol=1e-3)
    # exact division -> probs sum to 1 within f32 rounding
    assert jnp.allclose(jnp.sum(probs, axis=-1), 1.0, atol=1e-3)

    print("KERNEL_OK")
</pallas_src>

<mosaic_0001>
module attributes {stable_mosaic.version = 11 : i64} {
  func.func @_net_kernel(%arg0: memref<16x16xf32, #tpu.memory_space<vmem>>, %arg1: memref<16x128xf32, #tpu.memory_space<vmem>>, %arg2: memref<32x128xf32, #tpu.memory_space<vmem>>, %arg3: memref<1x128xf32, #tpu.memory_space<vmem>>, %arg4: memref<16x256xf32, #tpu.memory_space<vmem>>, %arg5: memref<32x256xf32, #tpu.memory_space<vmem>>, %arg6: memref<1x256xf32, #tpu.memory_space<vmem>>, %arg7: memref<128x128xf32, #tpu.memory_space<vmem>>, %arg8: memref<1x128xf32, #tpu.memory_space<vmem>>, %arg9: memref<1x128xf32, #tpu.memory_space<vmem>>, %arg10: memref<1x1xf32, #tpu.memory_space<vmem>>, %arg11: memref<2x128xf32, #tpu.memory_space<vmem>>) attributes {dimension_semantics = [], scalar_prefetch = 0 : i64, scratch_operands = 0 : i64, tpu.core_type = #tpu.core_type<tc>} {
    %c0 = arith.constant 0 : index
    %c0_0 = arith.constant 0 : index
    %0 = vector.load %arg0[%c0, %c0_0] : memref<16x16xf32, #tpu.memory_space<vmem>>, vector<16x16xf32>
    %c0_1 = arith.constant 0 : index
    %c0_2 = arith.constant 0 : index
    %1 = vector.load %arg1[%c0_1, %c0_2] : memref<16x128xf32, #tpu.memory_space<vmem>>, vector<16x128xf32>
    %cst = arith.constant dense<0.000000e+00> : vector<16x128xf32>
    %2 = tpu.matmul %0, %1, %cst {dimension_numbers = #tpu.dot_dimension_numbers<[1], [0], [0], [1], [0, 0, 1, 1], [], []>} : vector<16x16xf32>, vector<16x128xf32>, vector<16x128xf32> -> vector<16x128xf32>
    %c0_3 = arith.constant 0 : index
    %c0_4 = arith.constant 0 : index
    %3 = vector.load %arg3[%c0_3, %c0_4] : memref<1x128xf32, #tpu.memory_space<vmem>>, vector<1x128xf32>
    %4 = vector.broadcast %3 : vector<1x128xf32> to vector<16x128xf32>
    %5 = arith.addf %2, %4 : vector<16x128xf32>
    %c0_5 = arith.constant 0 : index
    %c0_6 = arith.constant 0 : index
    %6 = vector.load %arg2[%c0_5, %c0_6] : memref<32x128xf32, #tpu.memory_space<vmem>>, vector<32x128xf32>
    %cst_7 = arith.constant 0.000000e+00 : f32
    %7 = vector.broadcast %cst_7 : f32 to vector<2x32xf32>
    %cst_8 = arith.constant 0.000000e+00 : f32
    %8 = vector.broadcast %cst_8 : f32 to vector<2x32xf32>
    %9 = vector.extract_strided_slice %5 {offsets = [0, 0], sizes = [1, 128], strides = [1, 1]} : vector<16x128xf32> to vector<1x128xf32>
    %10 = vector.extract_strided_slice %5 {offsets = [8, 0], sizes = [1, 128], strides = [1, 1]} : vector<16x128xf32> to vector<1x128xf32>
    %11 = tpu.concatenate %9, %10 in 0 : vector<1x128xf32>, vector<1x128xf32> -> vector<2x128xf32>
    %cst_9 = arith.constant dense<0.000000e+00> : vector<2x128xf32>
    %12 = tpu.matmul %7, %6, %cst_9 {dimension_numbers = #tpu.dot_dimension_numbers<[1], [0], [0], [1], [0, 0, 1, 1], [], []>} : vector<2x32xf32>, vector<32x128xf32>, vector<2x128xf32> -> vector<2x128xf32>
    %13 = arith.addf %11, %12 : vector<2x128xf32>
    %14 = arith.negf %13 : vector<2x128xf32>
    %15 = math.exp %14 : vector<2x128xf32>
    %cst_10 = arith.constant 1.000000e+00 : f32
    %16 = vector.broadcast %cst_10 : f32 to vector<2x128xf32>
    %17 = arith.addf %16, %15 : vector<2x128xf32>
    %18 = arith.divf %16, %17 : vector<2x128xf32>
    %19 = vector.extract_strided_slice %18 {offsets = [0, 0], sizes = [2, 32], strides = [1, 1]} : vector<2x128xf32> to vector<2x32xf32>
    %20 = vector.extract_strided_slice %18 {offsets = [0, 32], sizes = [2, 32], strides = [1, 1]} : vector<2x128xf32> to vector<2x32xf32>
    %21 = vector.extract_strided_slice %18 {offsets = [0, 64], sizes = [2, 32], strides = [1, 1]} : vector<2x128xf32> to vector<2x32xf32>
    %cst_11 = arith.constant 2.000000e+00 : f32
    %22 = vector.broadcast %cst_11 : f32 to vector<2x32xf32>
    %23 = arith.mulf %22, %21 : vector<2x32xf32>
    %cst_12 = arith.constant 1.000000e+00 : f32
    %24 = vector.broadcast %cst_12 : f32 to vector<2x32xf32>
    %25 = arith.subf %23, %24 : vector<2x32xf32>
    %26 = vector.extract_strided_slice %18 {offsets = [0, 96], sizes = [2, 32], strides = [1, 1]} : vector<2x128xf32> to vector<2x32xf32>
    %27 = arith.mulf %20, %8 : vector<2x32xf32>
    %28 = arith.mulf %19, %25 : vector<2x32xf32>
    %29 = arith.addf %27, %28 : vector<2x32xf32>
    %30 = math.tanh %29 : vector<2x32xf32>
    %31 = arith.mulf %26, %30 : vector<2x32xf32>
    %32 = vector.extract_strided_slice %5 {offsets = [1, 0], sizes = [1, 128], strides = [1, 1]} : vector<16x128xf32> to vector<1x128xf32>
    %33 = vector.extract_strided_slice %5 {offsets = [9, 0], sizes = [1, 128], strides = [1, 1]} : vector<16x128xf32> to vector<1x128xf32>
    %34 = tpu.concatenate %32, %33 in 0 : vector<1x128xf32>, vector<1x128xf32> -> vector<2x128xf32>
    %cst_13 = arith.constant dense<0.000000e+00> : vector<2x128xf32>
    %35 = tpu.matmul %31, %6, %cst_13 {dimension_numbers = #tpu.dot_dimension_numbers<[1], [0], [0], [1], [0, 0, 1, 1], [], []>} : vector<2x32xf32>, vector<32x128xf32>, vector<2x128xf32> -> vector<2x128xf32>
    %36 = arith.addf %34, %35 : vector<2x128xf32>
    %37 = arith.negf %36 : vector<2x128xf32>
    %38 = math.exp %37 : vector<2x128xf32>
    %cst_14 = arith.constant 1.000000e+00 : f32
    %39 = vector.broadcast %cst_14 : f32 to vector<2x128xf32>
    %40 = arith.addf %39, %38 : vector<2x128xf32>
    %41 = arith.divf %39, %40 : vector<2x128xf32>
    %42 = vector.extract_strided_slice %41 {offsets = [0, 0], sizes = [2, 32], strides = [1, 1]} : vector<2x128xf32> to vector<2x32xf32>
    %43 = vector.extract_strided_slice %41 {offsets = [0, 32], sizes = [2, 32], strides = [1, 1]} : vector<2x128xf32> to vector<2x32xf32>
    %44 = vector.extract_strided_slice %41 {offsets = [0, 64], sizes = [2, 32], strides = [1, 1]} : vector<2x128xf32> to vector<2x32xf32>
    %cst_15 = arith.constant 2.000000e+00 : f32
    %45 = vector.broadcast %cst_15 : f32 to vector<2x32xf32>
    %46 = arith.mulf %45, %44 : vector<2x32xf32>
    %cst_16 = arith.constant 1.000000e+00 : f32
    %47 = vector.broadcast %cst_16 : f32 to vector<2x32xf32>
    %48 = arith.subf %46, %47 : vector<2x32xf32>
    %49 = vector.extract_strided_slice %41 {offsets = [0, 96], sizes = [2, 32], strides = [1, 1]} : vector<2x128xf32> to vector<2x32xf32>
    %50 = arith.mulf %43, %29 : vector<2x32xf32>
    %51 = arith.mulf %42, %48 : vector<2x32xf32>
    %52 = arith.addf %50, %51 : vector<2x32xf32>
    %53 = math.tanh %52 : vector<2x32xf32>
    %54 = arith.mulf %49, %53 : vector<2x32xf32>
    %55 = vector.extract_strided_slice %5 {offsets = [2, 0], sizes = [1, 128], strides = [1, 1]} : vector<16x128xf32> to vector<1x128xf32>
    %56 = vector.extract_strided_slice %5 {offsets = [10, 0], sizes = [1, 128], strides = [1, 1]} : vector<16x128xf32> to vector<1x128xf32>
    %57 = tpu.concatenate %55, %56 in 0 : vector<1x128xf32>, vector<1x128xf32> -> vector<2x128xf32>
    %cst_17 = arith.constant dense<0.000000e+00> : vector<2x128xf32>
    %58 = tpu.matmul %54, %6, %cst_17 {dimension_numbers = #tpu.dot_dimension_numbers<[1], [0], [0], [1], [0, 0, 1, 1], [], []>} : vector<2x32xf32>, vector<32x128xf32>, vector<2x128xf32> -> vector<2x128xf32>
    %59 = arith.addf %57, %58 : vector<2x128xf32>
    %60 = arith.negf %59 : vector<2x128xf32>
    %61 = math.exp %60 : vector<2x128xf32>
    %cst_18 = arith.constant 1.000000e+00 : f32
    %62 = vector.broadcast %cst_18 : f32 to vector<2x128xf32>
    %63 = arith.addf %62, %61 : vector<2x128xf32>
    %64 = arith.divf %62, %63 : vector<2x128xf32>
    %65 = vector.extract_strided_slice %64 {offsets = [0, 0], sizes = [2, 32], strides = [1, 1]} : vector<2x128xf32> to vector<2x32xf32>
    %66 = vector.extract_strided_slice %64 {offsets = [0, 32], sizes = [2, 32], strides = [1, 1]} : vector<2x128xf32> to vector<2x32xf32>
    %67 = vector.extract_strided_slice %64 {offsets = [0, 64], sizes = [2, 32], strides = [1, 1]} : vector<2x128xf32> to vector<2x32xf32>
    %cst_19 = arith.constant 2.000000e+00 : f32
    %68 = vector.broadcast %cst_19 : f32 to vector<2x32xf32>
    %69 = arith.mulf %68, %67 : vector<2x32xf32>
    %cst_20 = arith.constant 1.000000e+00 : f32
    %70 = vector.broadcast %cst_20 : f32 to vector<2x32xf32>
    %71 = arith.subf %69, %70 : vector<2x32xf32>
    %72 = vector.extract_strided_slice %64 {offsets = [0, 96], sizes = [2, 32], strides = [1, 1]} : vector<2x128xf32> to vector<2x32xf32>
    %73 = arith.mulf %66, %52 : vector<2x32xf32>
    %74 = arith.mulf %65, %71 : vector<2x32xf32>
    %75 = arith.addf %73, %74 : vector<2x32xf32>
    %76 = math.tanh %75 : vector<2x32xf32>
    %77 = arith.mulf %72, %76 : vector<2x32xf32>
    %78 = vector.extract_strided_slice %5 {offsets = [3, 0], sizes = [1, 128], strides = [1, 1]} : vector<16x128xf32> to vector<1x128xf32>
    %79 = vector.extract_strided_slice %5 {offsets = [11, 0], sizes = [1, 128], strides = [1, 1]} : vector<16x128xf32> to vector<1x128xf32>
    %80 = tpu.concatenate %78, %79 in 0 : vector<1x128xf32>, vector<1x128xf32> -> vector<2x128xf32>
    %cst_21 = arith.constant dense<0.000000e+00> : vector<2x128xf32>
    %81 = tpu.matmul %77, %6, %cst_21 {dimension_numbers = #tpu.dot_dimension_numbers<[1], [0], [0], [1], [0, 0, 1, 1], [], []>} : vector<2x32xf32>, vector<32x128xf32>, vector<2x128xf32> -> vector<2x128xf32>
    %82 = arith.addf %80, %81 : vector<2x128xf32>
    %83 = arith.negf %82 : vector<2x128xf32>
    %84 = math.exp %83 : vector<2x128xf32>
    %cst_22 = arith.constant 1.000000e+00 : f32
    %85 = vector.broadcast %cst_22 : f32 to vector<2x128xf32>
    %86 = arith.addf %85, %84 : vector<2x128xf32>
    %87 = arith.divf %85, %86 : vector<2x128xf32>
    %88 = vector.extract_strided_slice %87 {offsets = [0, 0], sizes = [2, 32], strides = [1, 1]} : vector<2x128xf32> to vector<2x32xf32>
    %89 = vector.extract_strided_slice %87 {offsets = [0, 32], sizes = [2, 32], strides = [1, 1]} : vector<2x128xf32> to vector<2x32xf32>
    %90 = vector.extract_strided_slice %87 {offsets = [0, 64], sizes = [2, 32], strides = [1, 1]} : vector<2x128xf32> to vector<2x32xf32>
    %cst_23 = arith.constant 2.000000e+00 : f32
    %91 = vector.broadcast %cst_23 : f32 to vector<2x32xf32>
    %92 = arith.mulf %91, %90 : vector<2x32xf32>
    %cst_24 = arith.constant 1.000000e+00 : f32
    %93 = vector.broadcast %cst_24 : f32 to vector<2x32xf32>
    %94 = arith.subf %92, %93 : vector<2x32xf32>
    %95 = vector.extract_strided_slice %87 {offsets = [0, 96], sizes = [2, 32], strides = [1, 1]} : vector<2x128xf32> to vector<2x32xf32>
    %96 = arith.mulf %89, %75 : vector<2x32xf32>
    %97 = arith.mulf %88, %94 : vector<2x32xf32>
    %98 = arith.addf %96, %97 : vector<2x32xf32>
    %99 = math.tanh %98 : vector<2x32xf32>
    %100 = arith.mulf %95, %99 : vector<2x32xf32>
    %101 = vector.extract_strided_slice %5 {offsets = [4, 0], sizes = [1, 128], strides = [1, 1]} : vector<16x128xf32> to vector<1x128xf32>
    %102 = vector.extract_strided_slice %5 {offsets = [12, 0], sizes = [1, 128], strides = [1, 1]} : vector<16x128xf32> to vector<1x128xf32>
    %103 = tpu.concatenate %101, %102 in 0 : vector<1x128xf32>, vector<1x128xf32> -> vector<2x128xf32>
    %cst_25 = arith.constant dense<0.000000e+00> : vector<2x128xf32>
    %104 = tpu.matmul %100, %6, %cst_25 {dimension_numbers = #tpu.dot_dimension_numbers<[1], [0], [0], [1], [0, 0, 1, 1], [], []>} : vector<2x32xf32>, vector<32x128xf32>, vector<2x128xf32> -> vector<2x128xf32>
    %105 = arith.addf %103, %104 : vector<2x128xf32>
    %106 = arith.negf %105 : vector<2x128xf32>
    %107 = math.exp %106 : vector<2x128xf32>
    %cst_26 = arith.constant 1.000000e+00 : f32
    %108 = vector.broadcast %cst_26 : f32 to vector<2x128xf32>
    %109 = arith.addf %108, %107 : vector<2x128xf32>
    %110 = arith.divf %108, %109 : vector<2x128xf32>
    %111 = vector.extract_strided_slice %110 {offsets = [0, 0], sizes = [2, 32], strides = [1, 1]} : vector<2x128xf32> to vector<2x32xf32>
    %112 = vector.extract_strided_slice %110 {offsets = [0, 32], sizes = [2, 32], strides = [1, 1]} : vector<2x128xf32> to vector<2x32xf32>
    %113 = vector.extract_strided_slice %110 {offsets = [0, 64], sizes = [2, 32], strides = [1, 1]} : vector<2x128xf32> to vector<2x32xf32>
    %cst_27 = arith.constant 2.000000e+00 : f32
    %114 = vector.broadcast %cst_27 : f32 to vector<2x32xf32>
    %115 = arith.mulf %114, %113 : vector<2x32xf32>
    %cst_28 = arith.constant 1.000000e+00 : f32
    %116 = vector.broadcast %cst_28 : f32 to vector<2x32xf32>
    %117 = arith.subf %115, %116 : vector<2x32xf32>
    %118 = vector.extract_strided_slice %110 {offsets = [0, 96], sizes = [2, 32], strides = [1, 1]} : vector<2x128xf32> to vector<2x32xf32>
    %119 = arith.mulf %112, %98 : vector<2x32xf32>
    %120 = arith.mulf %111, %117 : vector<2x32xf32>
    %121 = arith.addf %119, %120 : vector<2x32xf32>
    %122 = math.tanh %121 : vector<2x32xf32>
    %123 = arith.mulf %118, %122 : vector<2x32xf32>
    %124 = vector.extract_strided_slice %5 {offsets = [5, 0], sizes = [1, 128], strides = [1, 1]} : vector<16x128xf32> to vector<1x128xf32>
    %125 = vector.extract_strided_slice %5 {offsets = [13, 0], sizes = [1, 128], strides = [1, 1]} : vector<16x128xf32> to vector<1x128xf32>
    %126 = tpu.concatenate %124, %125 in 0 : vector<1x128xf32>, vector<1x128xf32> -> vector<2x128xf32>
    %cst_29 = arith.constant dense<0.000000e+00> : vector<2x128xf32>
    %127 = tpu.matmul %123, %6, %cst_29 {dimension_numbers = #tpu.dot_dimension_numbers<[1], [0], [0], [1], [0, 0, 1, 1], [], []>} : vector<2x32xf32>, vector<32x128xf32>, vector<2x128xf32> -> vector<2x128xf32>
    %128 = arith.addf %126, %127 : vector<2x128xf32>
    %129 = arith.negf %128 : vector<2x128xf32>
    %130 = math.exp %129 : vector<2x128xf32>
    %cst_30 = arith.constant 1.000000e+00 : f32
    %131 = vector.broadcast %cst_30 : f32 to vector<2x128xf32>
    %132 = arith.addf %131, %130 : vector<2x128xf32>
    %133 = arith.divf %131, %132 : vector<2x128xf32>
    %134 = vector.extract_strided_slice %133 {offsets = [0, 0], sizes = [2, 32], strides = [1, 1]} : vector<2x128xf32> to vector<2x32xf32>
    %135 = vector.extract_strided_slice %133 {offsets = [0, 32], sizes = [2, 32], strides = [1, 1]} : vector<2x128xf32> to vector<2x32xf32>
    %136 = vector.extract_strided_slice %133 {offsets = [0, 64], sizes = [2, 32], strides = [1, 1]} : vector<2x128xf32> to vector<2x32xf32>
    %cst_31 = arith.constant 2.000000e+00 : f32
    %137 = vector.broadcast %cst_31 : f32 to vector<2x32xf32>
    %138 = arith.mulf %137, %136 : vector<2x32xf32>
    %cst_32 = arith.constant 1.000000e+00 : f32
    %139 = vector.broadcast %cst_32 : f32 to vector<2x32xf32>
    %140 = arith.subf %138, %139 : vector<2x32xf32>
    %141 = vector.extract_strided_slice %133 {offsets = [0, 96], sizes = [2, 32], strides = [1, 1]} : vector<2x128xf32> to vector<2x32xf32>
    %142 = arith.mulf %135, %121 : vector<2x32xf32>
    %143 = arith.mulf %134, %140 : vector<2x32xf32>
    %144 = arith.addf %142, %143 : vector<2x32xf32>
    %145 = math.tanh %144 : vector<2x32xf32>
    %146 = arith.mulf %141, %145 : vector<2x32xf32>
    %147 = vector.extract_strided_slice %5 {offsets = [6, 0], sizes = [1, 128], strides = [1, 1]} : vector<16x128xf32> to vector<1x128xf32>
    %148 = vector.extract_strided_slice %5 {offsets = [14, 0], sizes = [1, 128], strides = [1, 1]} : vector<16x128xf32> to vector<1x128xf32>
    %149 = tpu.concatenate %147, %148 in 0 : vector<1x128xf32>, vector<1x128xf32> -> vector<2x128xf32>
    %cst_33 = arith.constant dense<0.000000e+00> : vector<2x128xf32>
    %150 = tpu.matmul %146, %6, %cst_33 {dimension_numbers = #tpu.dot_dimension_numbers<[1], [0], [0], [1], [0, 0, 1, 1], [], []>} : vector<2x32xf32>, vector<32x128xf32>, vector<2x128xf32> -> vector<2x128xf32>
    %151 = arith.addf %149, %150 : vector<2x128xf32>
    %152 = arith.negf %151 : vector<2x128xf32>
    %153 = math.exp %152 : vector<2x128xf32>
    %cst_34 = arith.constant 1.000000e+00 : f32
    %154 = vector.broadcast %cst_34 : f32 to vector<2x128xf32>
    %155 = arith.addf %154, %153 : vector<2x128xf32>
    %156 = arith.divf %154, %155 : vector<2x128xf32>
    %157 = vector.extract_strided_slice %156 {offsets = [0, 0], sizes = [2, 32], strides = [1, 1]} : vector<2x128xf32> to vector<2x32xf32>
    %158 = vector.extract_strided_slice %156 {offsets = [0, 32], sizes = [2, 32], strides = [1, 1]} : vector<2x128xf32> to vector<2x32xf32>
    %159 = vector.extract_strided_slice %156 {offsets = [0, 64], sizes = [2, 32], strides = [1, 1]} : vector<2x128xf32> to vector<2x32xf32>
    %cst_35 = arith.constant 2.000000e+00 : f32
    %160 = vector.broadcast %cst_35 : f32 to vector<2x32xf32>
    %161 = arith.mulf %160, %159 : vector<2x32xf32>
    %cst_36 = arith.constant 1.000000e+00 : f32
    %162 = vector.broadcast %cst_36 : f32 to vector<2x32xf32>
    %163 = arith.subf %161, %162 : vector<2x32xf32>
    %164 = vector.extract_strided_slice %156 {offsets = [0, 96], sizes = [2, 32], strides = [1, 1]} : vector<2x128xf32> to vector<2x32xf32>
    %165 = arith.mulf %158, %144 : vector<2x32xf32>
    %166 = arith.mulf %157, %163 : vector<2x32xf32>
    %167 = arith.addf %165, %166 : vector<2x32xf32>
    %168 = math.tanh %167 : vector<2x32xf32>
    %169 = arith.mulf %164, %168 : vector<2x32xf32>
    %170 = vector.extract_strided_slice %5 {offsets = [7, 0], sizes = [1, 128], strides = [1, 1]} : vector<16x128xf32> to vector<1x128xf32>
    %171 = vector.extract_strided_slice %5 {offsets = [15, 0], sizes = [1, 128], strides = [1, 1]} : vector<16x128xf32> to vector<1x128xf32>
    %172 = tpu.concatenate %170, %171 in 0 : vector<1x128xf32>, vector<1x128xf32> -> vector<2x128xf32>
    %cst_37 = arith.constant dense<0.000000e+00> : vector<2x128xf32>
    %173 = tpu.matmul %169, %6, %cst_37 {dimension_numbers = #tpu.dot_dimension_numbers<[1], [0], [0], [1], [0, 0, 1, 1], [], []>} : vector<2x32xf32>, vector<32x128xf32>, vector<2x128xf32> -> vector<2x128xf32>
    %174 = arith.addf %172, %173 : vector<2x128xf32>
    %175 = arith.negf %174 : vector<2x128xf32>
    %176 = math.exp %175 : vector<2x128xf32>
    %cst_38 = arith.constant 1.000000e+00 : f32
    %177 = vector.broadcast %cst_38 : f32 to vector<2x128xf32>
    %178 = arith.addf %177, %176 : vector<2x128xf32>
    %179 = arith.divf %177, %178 : vector<2x128xf32>
    %180 = vector.extract_strided_slice %179 {offsets = [0, 0], sizes = [2, 32], strides = [1, 1]} : vector<2x128xf32> to vector<2x32xf32>
    %181 = vector.extract_strided_slice %179 {offsets = [0, 32], sizes = [2, 32], strides = [1, 1]} : vector<2x128xf32> to vector<2x32xf32>
    %182 = vector.extract_strided_slice %179 {offsets = [0, 64], sizes = [2, 32], strides = [1, 1]} : vector<2x128xf32> to vector<2x32xf32>
    %cst_39 = arith.constant 2.000000e+00 : f32
    %183 = vector.broadcast %cst_39 : f32 to vector<2x32xf32>
    %184 = arith.mulf %183, %182 : vector<2x32xf32>
    %cst_40 = arith.constant 1.000000e+00 : f32
    %185 = vector.broadcast %cst_40 : f32 to vector<2x32xf32>
    %186 = arith.subf %184, %185 : vector<2x32xf32>
    %187 = vector.extract_strided_slice %179 {offsets = [0, 96], sizes = [2, 32], strides = [1, 1]} : vector<2x128xf32> to vector<2x32xf32>
    %188 = arith.mulf %181, %167 : vector<2x32xf32>
    %189 = arith.mulf %180, %186 : vector<2x32xf32>
    %190 = arith.addf %188, %189 : vector<2x32xf32>
    %191 = math.tanh %190 : vector<2x32xf32>
    %192 = arith.mulf %187, %191 : vector<2x32xf32>
    %193 = vector.extract_strided_slice %0 {offsets = [0, 0], sizes = [1, 16], strides = [1, 1]} : vector<16x16xf32> to vector<1x16xf32>
    %194 = vector.extract_strided_slice %0 {offsets = [8, 0], sizes = [1, 16], strides = [1, 1]} : vector<16x16xf32> to vector<1x16xf32>
    %195 = tpu.concatenate %193, %194 in 0 : vector<1x16xf32>, vector<1x16xf32> -> vector<2x16xf32>
    %c0_41 = arith.constant 0 : index
    %c0_42 = arith.constant 0 : index
    %196 = vector.load %arg4[%c0_41, %c0_42] : memref<16x256xf32, #tpu.memory_space<vmem>>, vector<16x256xf32>
    %cst_43 = arith.constant dense<0.000000e+00> : vector<2x256xf32>
    %197 = tpu.matmul %195, %196, %cst_43 {dimension_numbers = #tpu.dot_dimension_numbers<[1], [0], [0], [1], [0, 0, 1, 1], [], []>} : vector<2x16xf32>, vector<16x256xf32>, vector<2x256xf32> -> vector<2x256xf32>
    %c0_44 = arith.constant 0 : index
    %c0_45 = arith.constant 0 : index
    %198 = vector.load %arg5[%c0_44, %c0_45] : memref<32x256xf32, #tpu.memory_space<vmem>>, vector<32x256xf32>
    %cst_46 = arith.constant dense<0.000000e+00> : vector<2x256xf32>
    %199 = tpu.matmul %192, %198, %cst_46 {dimension_numbers = #tpu.dot_dimension_numbers<[1], [0], [0], [1], [0, 0, 1, 1], [], []>} : vector<2x32xf32>, vector<32x256xf32>, vector<2x256xf32> -> vector<2x256xf32>
    %200 = arith.addf %197, %199 : vector<2x256xf32>
    %c0_47 = arith.constant 0 : index
    %c0_48 = arith.constant 0 : index
    %201 = vector.load %arg6[%c0_47, %c0_48] : memref<1x256xf32, #tpu.memory_space<vmem>>, vector<1x256xf32>
    %202 = vector.broadcast %201 : vector<1x256xf32> to vector<2x256xf32>
    %203 = arith.addf %200, %202 : vector<2x256xf32>
    %cst_49 = arith.constant 0.000000e+00 : f32
    %204 = vector.broadcast %cst_49 : f32 to vector<2x256xf32>
    %205 = arith.maximumf %203, %204 : vector<2x256xf32>
    %206 = vector.extract_strided_slice %205 {offsets = [0, 0], sizes = [2, 128], strides = [1, 1]} : vector<2x256xf32> to vector<2x128xf32>
    %c0_50 = arith.constant 0 : index
    %c0_51 = arith.constant 0 : index
    %207 = vector.load %arg7[%c0_50, %c0_51] : memref<128x128xf32, #tpu.memory_space<vmem>>, vector<128x128xf32>
    %cst_52 = arith.constant dense<0.000000e+00> : vector<2x128xf32>
    %208 = tpu.matmul %206, %207, %cst_52 {dimension_numbers = #tpu.dot_dimension_numbers<[1], [0], [0], [1], [0, 0, 1, 1], [], []>} : vector<2x128xf32>, vector<128x128xf32>, vector<2x128xf32> -> vector<2x128xf32>
    %c0_53 = arith.constant 0 : index
    %c0_54 = arith.constant 0 : index
    %209 = vector.load %arg8[%c0_53, %c0_54] : memref<1x128xf32, #tpu.memory_space<vmem>>, vector<1x128xf32>
    %210 = vector.broadcast %209 : vector<1x128xf32> to vector<2x128xf32>
    %211 = arith.addf %208, %210 : vector<2x128xf32>
    %212 = vector.extract_strided_slice %205 {offsets = [0, 128], sizes = [2, 128], strides = [1, 1]} : vector<2x256xf32> to vector<2x128xf32>
    %c0_55 = arith.constant 0 : index
    %c0_56 = arith.constant 0 : index
    %213 = vector.load %arg9[%c0_55, %c0_56] : memref<1x128xf32, #tpu.memory_space<vmem>>, vector<1x128xf32>
    %214 = vector.broadcast %213 : vector<1x128xf32> to vector<2x128xf32>
    %215 = arith.mulf %212, %214 : vector<2x128xf32>
    %cst_57 = arith.constant dense<0.000000e+00> : vector<2xf32>
    %216 = vector.multi_reduction <add>, %215, %cst_57 [1] : vector<2x128xf32> to vector<2xf32>
    %217 = vector.shape_cast %216 : vector<2xf32> to vector<2x1xf32>
    %c0_58 = arith.constant 0 : index
    %c0_59 = arith.constant 0 : index
    %218 = vector.load %arg10[%c0_58, %c0_59] : memref<1x1xf32, #tpu.memory_space<vmem>>, vector<1x1xf32>
    %219 = vector.broadcast %218 : vector<1x1xf32> to vector<2x1xf32>
    %220 = arith.addf %217, %219 : vector<2x1xf32>
    %221 = tpu.iota {dimensions = array<i32: 1>} : vector<2x128xi32>
    %c81_i32 = arith.constant 81 : i32
    %222 = vector.broadcast %c81_i32 : i32 to vector<2x128xi32>
    %223 = arith.cmpi slt, %221, %222 : vector<2x128xi32>
    %cst_60 = arith.constant 0xFF800000 : f32
    %224 = vector.broadcast %cst_60 : f32 to vector<2x128xf32>
    %225 = arith.select %223, %211, %224 : vector<2x128xi1>, vector<2x128xf32>
    %cst_61 = arith.constant dense<0xFF800000> : vector<2xf32>
    %226 = vector.multi_reduction <maximumf>, %225, %cst_61 [1] : vector<2x128xf32> to vector<2xf32>
    %227 = vector.shape_cast %226 : vector<2xf32> to vector<2x1xf32>
    %228 = vector.broadcast %227 : vector<2x1xf32> to vector<2x128xf32>
    %229 = arith.subf %225, %228 : vector<2x128xf32>
    %230 = math.exp %229 : vector<2x128xf32>
    %cst_62 = arith.constant dense<0.000000e+00> : vector<2xf32>
    %231 = vector.multi_reduction <add>, %230, %cst_62 [1] : vector<2x128xf32> to vector<2xf32>
    %232 = vector.shape_cast %231 : vector<2xf32> to vector<2x1xf32>
    %233 = vector.broadcast %232 : vector<2x1xf32> to vector<2x128xf32>
    %234 = arith.divf %230, %233 : vector<2x128xf32>
    %c81_i32_63 = arith.constant 81 : i32
    %235 = vector.broadcast %c81_i32_63 : i32 to vector<2x128xi32>
    %236 = arith.cmpi eq, %221, %235 : vector<2x128xi32>
    %cst_64 = arith.constant 0.000000e+00 : f32
    %237 = vector.shape_cast %220 : vector<2x1xf32> to vector<2x1xf32>
    %238 = vector.broadcast %237 : vector<2x1xf32> to vector<2x128xf32>
    %239 = vector.broadcast %cst_64 : f32 to vector<2x128xf32>
    %240 = arith.select %236, %238, %239 : vector<2x128xi1>, vector<2x128xf32>
    %241 = arith.addf %234, %240 : vector<2x128xf32>
    %c0_65 = arith.constant 0 : index
    %c0_66 = arith.constant 0 : index
    %242 = vector.load %arg11[%c0_65, %c0_66] : memref<2x128xf32, #tpu.memory_space<vmem>>, vector<2x128xf32>
    tpu.vector_store %arg11[%c0_65, %c0_66], %241 {strides = array<i32>} : memref<2x128xf32, #tpu.memory_space<vmem>>, vector<2x128xf32>,
    return
  }
}

</mosaic_0001>

<bundles_post_ra>
// kernel: net_forward.1
= control target key start
LH: loop header
LB: loop body
LE: loop exit
PB: predicated region body
PF: predicated region fallthrough
CT: control target
= control target key end

     0   :  { %s2123_s0 = inlined_call_operand.hbm [shape: f32[16,16], index: 0, kind: input, shape index: {}]   ;;  %s2124_s1 = inlined_call_operand.hbm [shape: f32[16,128], index: 1, kind: input, shape index: {}]   ;;  %s2125_s2 = inlined_call_operand.hbm [shape: f32[32,128], index: 2, kind: input, shape index: {}]   ;;  %s2126_s3 = inlined_call_operand.vmem [shape: f32[1,128], index: 3, kind: input, shape index: {}]   ;;  %s2127_s4 = inlined_call_operand.hbm [shape: f32[16,256], index: 4, kind: input, shape index: {}]   ;;  %s2128_s5 = inlined_call_operand.hbm [shape: f32[32,256], index: 5, kind: input, shape index: {}]   ;;  %s2129_s6 = inlined_call_operand.vmem [shape: f32[1,256], index: 6, kind: input, shape index: {}]   ;;  %s2130_s7 = inlined_call_operand.hbm [shape: f32[128,128], index: 7, kind: input, shape index: {}]   ;;  %s2131_s8 = inlined_call_operand.vmem [shape: f32[1,128], index: 8, kind: input, shape index: {}]   ;;  %s2132_s9 = inlined_call_operand.vmem [shape: f32[1,128], index: 9, kind: input, shape index: {}]   ;;  %s2133_s10 = inlined_call_operand.<no memory space> [shape: f32[1,1], index: 10, kind: input, shape index: {}]   ;;  %s2134_s11 = inlined_call_operand.vmem [shape: f32[2,128], index: 11, kind: output, shape index: {}]  }
   0x1   :  { %v16_v0 = vstv %s2133_s10 }
   0x2   :  { %17 = vst [vmem:[#allocation2] sm:$0x1] %v16_v0 }
   0x3   :  { %18 = vsyncpa [#allocation4], 0 }
   0x4   :  { %19 = vsyncpa [#allocation6], 0 }
   0x5   :  { %20 = vsyncpa [#allocation9], 0 }
   0x6   :  { %21 = vsyncpa [#allocation12], 0  ;;  %s1809_s19 = smov [#allocation5]   ;;  %s1810_s21 = smov [#allocation8]  }
   0x7   :  { %s39_s20 = sshll.u32 %s1809_s19, 4  ;;  %s65_s22 = sshll.u32 %s1810_s21, 4  ;;  %s40_s20 = int_to_ptr.vmem [resolvable:$true] %s39_s20  ;;  %s66_s22 = int_to_ptr.vmem [resolvable:$true] %s65_s22 }
   0x8   :  { %s1689_s23 = scalar_lea.vmem %s40_s20, 256  ;;  %p1694_p1 = scmp.lt.s32.totalorder %s40_s20, %s40_s20 }
   0x9   :  { %p1690_p0 = scmp.ne.s32.totalorder %s40_s20, %s1689_s23  ;;  %p1695_p2 = scmp.lt.s32.totalorder %s1689_s23, %s1689_s23 }
   0xb   :  { %p1696_p3 = por %p1695_p2, %p1694_p1 }
   0xd   :  { %p1697_p4 = pnand %p1696_p3, %p1690_p0 }
   0xf   :  { %1700 = shalt.err (!%p1697_p4)
}
  0x10   :  { %s1811_s24 = smov 128   ;;  %s1812_s10 = smov 8  }
  0x11   :  { %45 = dma.hbm_to_vmem [thread:$0]  %s2124_s1, 256, %s40_s20, [#allocation6], %s1811_s24, %s1811_s24, %s1812_s10  }
  0x12   :  { %s1709_s27 = scalar_lea.vmem %s66_s22, 512  ;;  %p1714_p6 = scmp.lt.s32.totalorder %s66_s22, %s66_s22 }
  0x13   :  { %p1710_p5 = scmp.ne.s32.totalorder %s66_s22, %s1709_s27  ;;  %p1715_p7 = scmp.lt.s32.totalorder %s1709_s27, %s1709_s27 }
  0x15   :  { %p1716_p8 = por %p1715_p7, %p1714_p6 }
  0x17   :  { %p1717_p9 = pnand %p1716_p8, %p1710_p5 }
  0x19   :  { %1720 = shalt.err (!%p1717_p9)
}
  0x1a   :  { %s1813_s28 = smov 256   ;;  %s1814_s29 = smov 16  }
  0x1b   :  { %71 = dma.hbm_to_vmem [thread:$0]  %s2127_s4, 512, %s66_s22, [#allocation9], %s1813_s28, %s1813_s28, %s1814_s29  }
  0x1c   :  { %s1815_s13 = smov [#allocation3]   ;;  %s1816_s15 = smov [#allocation7]  }
  0x1d   :  { %s27_s14 = sshll.u32 %s1815_s13, 4  ;;  %s51_s1 = sshll.u32 %s1816_s15, 4  ;;  %s28_s14 = int_to_ptr.vmem [resolvable:$true] %s27_s14  ;;  %s52_s1 = int_to_ptr.vmem [resolvable:$true] %s51_s1 }
  0x1e   :  { %s1729_s16 = scalar_lea.vmem %s28_s14, 256  ;;  %p1734_p11 = scmp.lt.s32.totalorder %s28_s14, %s28_s14 }
  0x1f   :  { %p1730_p10 = scmp.ne.s32.totalorder %s28_s14, %s1729_s16  ;;  %p1735_p12 = scmp.lt.s32.totalorder %s1729_s16, %s1729_s16 }
  0x21   :  { %p1736_p13 = por %p1735_p12, %p1734_p11 }
  0x23   :  { %p1737_p0 = pnand %p1736_p13, %p1730_p10 }
  0x25   :  { %1740 = shalt.err (!%p1737_p0)
}
  0x26   :  { %33 = dma.hbm_to_vmem [thread:$0]  %s2123_s0, 256, %s28_s14, [#allocation4], %s1811_s24, %s1811_s24, %s1812_s10  }
  0x27   :  { %s1749_s4 = scalar_lea.vmem %s52_s1, 512  ;;  %p1754_p2 = scmp.lt.s32.totalorder %s52_s1, %s52_s1 }
  0x28   :  { %p1750_p1 = scmp.ne.s32.totalorder %s52_s1, %s1749_s4  ;;  %p1755_p3 = scmp.lt.s32.totalorder %s1749_s4, %s1749_s4 }
  0x2a   :  { %p1756_p4 = por %p1755_p3, %p1754_p2 }
  0x2c   :  { %p1757_p5 = pnand %p1756_p4, %p1750_p1 }
  0x2e   :  { %1760 = shalt.err (!%p1757_p5)
}
  0x2f   :  { %57 = dma.hbm_to_vmem [thread:$0]  %s2125_s2, 512, %s52_s1, [#allocation6], %s1811_s24, %s1811_s24, %s1812_s10  }
  0x30   :  { %s1817_s21 = smov [#allocation10]   ;;  %s1818_s23 = smov [#allocation11]  }
  0x31   :  { %s77_s22 = sshll.u32 %s1817_s21, 4  ;;  %s91_s25 = sshll.u32 %s1818_s23, 4  ;;  %s78_s22 = int_to_ptr.vmem [resolvable:$true] %s77_s22  ;;  %s92_s25 = int_to_ptr.vmem [resolvable:$true] %s91_s25 }
  0x32   :  { %s1769_s0 = scalar_lea.vmem %s78_s22, 1024  ;;  %p1774_p7 = scmp.lt.s32.totalorder %s78_s22, %s78_s22 }
  0x33   :  { %p1770_p6 = scmp.ne.s32.totalorder %s78_s22, %s1769_s0  ;;  %p1775_p8 = scmp.lt.s32.totalorder %s1769_s0, %s1769_s0 }
  0x35   :  { %p1776_p9 = por %p1775_p8, %p1774_p7 }
  0x37   :  { %p1777_p10 = pnand %p1776_p9, %p1770_p6 }
  0x39   :  { %1780 = shalt.err (!%p1777_p10)
}
  0x3a   :  { %83 = dma.hbm_to_vmem [thread:$0]  %s2128_s5, 1024, %s78_s22, [#allocation9], %s1813_s28, %s1813_s28, %s1814_s29  }
  0x3b   :  { %s1789_s2 = scalar_lea.vmem %s92_s25, 2048  ;;  %p1794_p12 = scmp.lt.s32.totalorder %s92_s25, %s92_s25 }
  0x3c   :  { %p1790_p11 = scmp.ne.s32.totalorder %s92_s25, %s1789_s2  ;;  %p1795_p13 = scmp.lt.s32.totalorder %s1789_s2, %s1789_s2 }
  0x3e   :  { %p1796_p0 = por %p1795_p13, %p1794_p12 }
  0x40   :  { %p1797_p1 = pnand %p1796_p0, %p1790_p11 }
  0x42   :  { %1800 = shalt.err (!%p1797_p1)
}
  0x43   :  { %97 = dma.hbm_to_vmem [thread:$0]  %s2130_s7, 2048, %s92_s25, [#allocation12], %s1811_s24, %s1811_s24, %s1812_s10  }
  0x44   :  { %1801 = dma.done.wait [#allocation4], 256  }
  0x45   :  { %1802 = vsyncadd [#allocation4], 4294967040 }
  0x46   :  { %1803 = dma.done.wait [#allocation6], 768  }
  0x47   :  { %1804 = vsyncadd [#allocation6], 4294966528 }
  0x48   :  { %1805 = dma.done.wait [#allocation9], 1536  }
  0x49   :  { %1806 = vsyncadd [#allocation9], 4294965760 }
  0x4a   :  { %1807 = dma.done.wait [#allocation12], 2048  }
  0x4b   :  { %1808 = vsyncadd [#allocation12], 4294965248  ;;  %v1819_v1 = vmov 0.0   ;;  %vm1820_vm0 = vmmov 0   ;;  %v125_v2 = vld [vmem:[#allocation5 + $0x8] sm:$0xff]  ;;  %v124_v4 = vld [vmem:[#allocation5] sm:$0xff] }
  0x4c   :  { %1490 = vmatprep.subr.mxu1 %v1819_v1  ;;  %1498 = vmatprep.mubr.msk.f32.mxu1 %vm1820_vm0, %v1819_v1  ;;  %v1926_v3 = vld [vmem:[#allocation7 + $0x18] sm:$0xff]  ;;  %v1929_v5 = vld [vmem:[#allocation7 + $0x10] sm:$0xff]  ;;  %v122_v6 = vld [vmem:[#allocation3] sm:$0xff]  ;;  %vm133_vm1 = vcmask 130048   ;;  %vm222_vm2 = vcmask 1040384   ;;  %s1822_s24 = smov 32  }
  0x4d   :  { %1483 = vmatprep.subr.mxu0 %v125_v2  ;;  %1491 = vmatpush3.msra.mxu1 %v1926_v3  ;;  %v123_v7 = vld [vmem:[#allocation3 + $0x8] sm:$0xff]  ;;  %v1941_v11 = vld [vmem:[#allocation7] sm:$0xff]  ;;  %v1391_v12 = vld [vmem:[%s2126_s3] ss:$0 sm:$0xff]  ;;  %s1821_s3 = smov 64   ;;  %vm224_vm3 = vcmask 261120  }
  0x4e   :  { %1484 = vmatpush3.msra.mxu0 %v125_v2  ;;  %1492 = vmatprep.subr.mxu1 %v1819_v1  ;;  %v1065_v8 = vrot.slane %v123_v7, 7  ;;  %v1933_v9 = vld [vmem:[#allocation7 + $0x8] sm:$0xff]  ;;  %vm1347_vm4 = vcmask 1041408  }
  0x4f   :  { %1485 = vmatprep.subr.mxu0 %v124_v4  ;;  %1493 = vmatpush3.msra.mxu1 %v1929_v5 }
  0x50   :  { %1486 = vmatpush3.msra.mxu0 %v124_v4  ;;  %1487 = vmatprep.mubr.msk.f32.mxu0 %vm133_vm1, %v122_v6  ;;  %v1937_v10 = vsel %vm222_vm2, %v122_v6, %v1065_v8 }
  0x51   :  { %1494 = vmatprep.subr.mxu1 %v1819_v1  ;;  %1488 = vmatmul.mubr.msk.f32.vlgmr.msra.gmra.mxu0 %vm133_vm1, %v123_v7 }
  0x52   :  { %1495 = vmatpush3.msra.mxu1 %v1933_v9  ;;  %1545 = vmatprep.subr.mxu0 %v1819_v1 }
  0x53   :  { %1496 = vmatprep.subr.mxu1 %v1819_v1  ;;  %1546 = vmatpush3.msra.mxu0 %v1926_v3 }
  0x54   :  { %1497 = vmatpush3.msra.mxu1 %v1941_v11  ;;  %1547 = vmatprep.subr.mxu0 %v1819_v1 }
  0x55   :  { %1499 = vmatmul.mubr.f32.vlgmr.msra.gmra.mxu1 %v1819_v1  ;;  %1501 = vmatprep.subr.mxu1 %v1819_v1 }
  0x56   :  { %1502 = vmatpush3.msra.mxu1 %v1926_v3  ;;  %1509 = vmatprep.mubr.msk.f32.mxu1 %vm1820_vm0, %v1819_v1 }
  0x57   :  { %1503 = vmatprep.subr.mxu1 %v1819_v1  ;;  %1548 = vmatpush3.msra.mxu0 %v1929_v5 }
  0x58   :  { %1504 = vmatpush3.msra.mxu1 %v1929_v5  ;;  %1549 = vmatprep.subr.mxu0 %v1819_v1 }
  0x59   :  { %1505 = vmatprep.subr.mxu1 %v1819_v1  ;;  %1550 = vmatpush3.msra.mxu0 %v1933_v9 }
  0x5a   :  { %1506 = vmatpush3.msra.mxu1 %v1933_v9  ;;  %1551 = vmatprep.subr.mxu0 %v1819_v1 }
  0x5b   :  { %1507 = vmatprep.subr.mxu1 %v1819_v1  ;;  %1552 = vmatpush3.msra.mxu0 %v1941_v11 }
  0x5c   :  { %1508 = vmatpush3.msra.mxu1 %v1941_v11  ;;  %1553 = vmatprep.mubr.msk.f32.mxu0 %vm1820_vm0, %v1819_v1 }
  0x5d   :  { %1512 = vmatprep.subr.mxu1 %v1819_v1  ;;  %1567 = vmatprep.subr.mxu0 %v1819_v1 }
 0x111   :  { %v1489_v13 = vpop.f32.mrf.mxu0 }
 0x112   :  { %v212_v14 = vadd.f32 %v1489_v13, %v1391_v12 }
 0x113   :  { %v206_v15 = vpop.f32.mrf.mxu0 }
 0x114   :  { %v207_v16 = vadd.f32 %v1391_v12, %v206_v15  ;;  %v220_v17 = vrot.slane %v212_v14, 7  ;;  %v431_v18 = vrot.slane %v212_v14, 1  ;;  %v537_v19 = vrot.slane %v212_v14, 2 }
 0x115   :  { %v294_v20 = vpop.f32.mrf.mxu1  ;;  %v643_v21 = vrot.slane %v212_v14, 3  ;;  %v749_v22 = vrot.slane %v212_v14, 4  ;;  %v855_v23 = vrot.slane %v212_v14, 5  ;;  %v961_v24 = vrot.slane %v212_v14, 6 }
 0x116   :  { %v223_v25 = vsel %vm222_vm2, %v207_v16, %v220_v17  ;;  %v325_v26 = vrot.slane %v207_v16, 1  ;;  %v429_v27 = vrot.slane %v207_v16, 2  ;;  %v535_v28 = vrot.slane %v207_v16, 3 }
 0x117   :  { %v298_v29 = vadd.f32 %v294_v20, %v223_v25  ;;  %v1500_v30 = vpop.f32.mrf.mxu1  ;;  %v641_v31 = vrot.slane %v207_v16, 4  ;;  %v747_v32 = vrot.slane %v207_v16, 5  ;;  %v853_v33 = vrot.slane %v207_v16, 6 }
 0x118   :  { %v327_v34 = vsel %vm222_vm2, %v325_v26, %v212_v14  ;;  %v1975_v35 = vsel %vm222_vm2, %v429_v27, %v431_v18  ;;  %v1978_v36 = vsel %vm222_vm2, %v535_v28, %v537_v19  ;;  %v959_v37 = vrot.slane %v207_v16, 7 }
 0x119   :  { %v1394_v38 = vmul.f32 -1.442695, %v298_v29  ;;  %v1981_v39 = vsel %vm222_vm2, %v641_v31, %v643_v21  ;;  %v1984_v40 = vsel %vm222_vm2, %v747_v32, %v749_v22  ;;  %v1987_v41 = vsel %vm222_vm2, %v853_v33, %v855_v23 }
 0x11a   :  { %v1990_v42 = vsel %vm222_vm2, %v959_v37, %v961_v24 }
 0x11b   :  { %1629 = vpow2.f32 %v1394_v38 }
 0x128   :  { %v1630_v43 = vpop.eup %1629 }
 0x129   :  { %v302_v44 = vadd.f32 1.0, %v1630_v43 }
 0x12b   :  { %1631 = vrcp.f32 %v302_v44 }
 0x138   :  { %v1632_v45 = vpop.eup %1631 }
 0x139   :  { %v305_v46 = vmul.f32 2.0, %v1632_v45  ;;  %v307_v50 = vmul.f32 0.0, %v1632_v45 }
 0x13b   :  { %v1395_v47 = vadd.f32 -1.0, %v305_v46 }
 0x13d   :  { %309 = vrot.lane.b32.xlu0 %v1395_v47, %s1821_s3 }
 0x1af   :  { %v310_v48 = vpop.permute.xlu0 %309 }
 0x1b0   :  { %v312_v49 = vmul.f32 %v1632_v45, %v310_v48 }
 0x1b2   :  { %314 = vrot.lane.b32.xlu0 %v312_v49, %s1822_s24 }
 0x224   :  { %v315_v51 = vpop.permute.xlu0 %314 }
 0x225   :  { %v317_v52 = vadd.f32 %v315_v51, %v307_v50 }
 0x227   :  { %1633 = vtanh.f32 %v317_v52 }
 0x234   :  { %v1634_v53 = vpop.eup %1633 }
 0x235   :  { %320 = vrot.lane.b32.xlu1 %v1634_v53, %s1821_s3 }
 0x2a7   :  { %v321_v54 = vpop.permute.xlu1 %320 }
 0x2a8   :  { %v323_v55 = vmul.f32 %v1632_v45, %v321_v54 }
 0x2aa   :  { %329 = vrot.lane.b32.xlu1 %v323_v55, %s1822_s24 }
 0x31c   :  { %v330_v56 = vpop.permute.xlu1 %329 }
 0x31d   :  { %1510 = vmatmul.mubr.msk.f32.vlgmr.msra.gmra.mxu1 %vm224_vm3, %v330_v56 }
 0x31e   :  { %1513 = vmatpush3.msra.mxu1 %v1926_v3  ;;  %1520 = vmatprep.mubr.msk.f32.mxu1 %vm1820_vm0, %v1819_v1 }
 0x31f   :  { %1514 = vmatprep.subr.mxu1 %v1819_v1 }
 0x320   :  { %1515 = vmatpush3.msra.mxu1 %v1929_v5 }
 0x321   :  { %1516 = vmatprep.subr.mxu1 %v1819_v1 }
 0x322   :  { %1517 = vmatpush3.msra.mxu1 %v1933_v9 }
 0x323   :  { %1518 = vmatprep.subr.mxu1 %v1819_v1 }
 0x324   :  { %1519 = vmatpush3.msra.mxu1 %v1941_v11 }
 0x325   :  { %1523 = vmatprep.subr.mxu1 %v1819_v1 }
 0x3dd   :  { %v399_v57 = vpop.f32.mrf.mxu1 }
 0x3de   :  { %v403_v58 = vadd.f32 %v399_v57, %v327_v34 }
 0x3df   :  { %v1511_v59 = vpop.f32.mrf.mxu1 }
 0x3e0   :  { %v1397_v60 = vmul.f32 -1.442695, %v403_v58 }
 0x3e2   :  { %1635 = vpow2.f32 %v1397_v60 }
 0x3ef   :  { %v1636_v61 = vpop.eup %1635 }
 0x3f0   :  { %v407_v62 = vadd.f32 1.0, %v1636_v61 }
 0x3f2   :  { %1637 = vrcp.f32 %v407_v62 }
 0x3ff   :  { %v1638_v63 = vpop.eup %1637 }
 0x400   :  { %v410_v0 = vmul.f32 2.0, %v1638_v63  ;;  %v412_v7 = vmul.f32 %v1638_v63, %v317_v52 }
 0x402   :  { %v1398_v2 = vadd.f32 -1.0, %v410_v0 }
 0x404   :  { %414 = vrot.lane.b32.xlu0 %v1398_v2, %s1821_s3 }
 0x476   :  { %v415_v4 = vpop.permute.xlu0 %414 }
 0x477   :  { %v417_v6 = vmul.f32 %v1638_v63, %v415_v4 }
 0x479   :  { %419 = vrot.lane.b32.xlu1 %v417_v6, %s1822_s24 }
 0x4eb   :  { %v420_v8 = vpop.permute.xlu1 %419 }
 0x4ec   :  { %v422_v12 = vadd.f32 %v420_v8, %v412_v7 }
 0x4ee   :  { %1639 = vtanh.f32 %v422_v12 }
 0x4fb   :  { %v1640_v13 = vpop.eup %1639 }
 0x4fc   :  { %425 = vrot.lane.b32.xlu0 %v1640_v13, %s1821_s3 }
 0x56e   :  { %v426_v14 = vpop.permute.xlu0 %425 }
 0x56f   :  { %v428_v15 = vmul.f32 %v1638_v63, %v426_v14 }
 0x571   :  { %435 = vrot.lane.b32.xlu1 %v428_v15, %s1822_s24 }
 0x5e3   :  { %v436_v16 = vpop.permute.xlu1 %435 }
 0x5e4   :  { %1521 = vmatmul.mubr.msk.f32.vlgmr.msra.gmra.mxu1 %vm224_vm3, %v436_v16 }
 0x5e5   :  { %1524 = vmatpush3.msra.mxu1 %v1926_v3  ;;  %1531 = vmatprep.mubr.msk.f32.mxu1 %vm1820_vm0, %v1819_v1 }
 0x5e6   :  { %1525 = vmatprep.subr.mxu1 %v1819_v1 }
 0x5e7   :  { %1526 = vmatpush3.msra.mxu1 %v1929_v5 }
 0x5e8   :  { %1527 = vmatprep.subr.mxu1 %v1819_v1 }
 0x5e9   :  { %1528 = vmatpush3.msra.mxu1 %v1933_v9 }
 0x5ea   :  { %1529 = vmatprep.subr.mxu1 %v1819_v1 }
 0x5eb   :  { %1530 = vmatpush3.msra.mxu1 %v1941_v11 }
 0x5ec   :  { %1534 = vmatprep.subr.mxu1 %v1819_v1 }
 0x6a4   :  { %v505_v17 = vpop.f32.mrf.mxu1 }
 0x6a5   :  { %v509_v18 = vadd.f32 %v505_v17, %v1975_v35 }
 0x6a6   :  { %v1522_v19 = vpop.f32.mrf.mxu1 }
 0x6a7   :  { %v1400_v20 = vmul.f32 -1.442695, %v509_v18 }
 0x6a9   :  { %1641 = vpow2.f32 %v1400_v20 }
 0x6b6   :  { %v1642_v21 = vpop.eup %1641 }
 0x6b7   :  { %v513_v22 = vadd.f32 1.0, %v1642_v21 }
 0x6b9   :  { %1643 = vrcp.f32 %v513_v22 }
 0x6c6   :  { %v1644_v23 = vpop.eup %1643 }
 0x6c7   :  { %v516_v24 = vmul.f32 2.0, %v1644_v23  ;;  %v518_v28 = vmul.f32 %v1644_v23, %v422_v12 }
 0x6c9   :  { %v1401_v25 = vadd.f32 -1.0, %v516_v24 }
 0x6cb   :  { %520 = vrot.lane.b32.xlu0 %v1401_v25, %s1821_s3 }
 0x73d   :  { %v521_v26 = vpop.permute.xlu0 %520 }
 0x73e   :  { %v523_v27 = vmul.f32 %v1644_v23, %v521_v26 }
 0x740   :  { %525 = vrot.lane.b32.xlu1 %v523_v27, %s1822_s24 }
 0x7b2   :  { %v526_v29 = vpop.permute.xlu1 %525 }
 0x7b3   :  { %v528_v30 = vadd.f32 %v526_v29, %v518_v28 }
 0x7b5   :  { %1645 = vtanh.f32 %v528_v30 }
 0x7c2   :  { %v1646_v31 = vpop.eup %1645 }
 0x7c3   :  { %531 = vrot.lane.b32.xlu0 %v1646_v31, %s1821_s3 }
 0x835   :  { %v532_v32 = vpop.permute.xlu0 %531 }
 0x836   :  { %v534_v33 = vmul.f32 %v1644_v23, %v532_v32 }
 0x838   :  { %541 = vrot.lane.b32.xlu1 %v534_v33, %s1822_s24 }
 0x8aa   :  { %v542_v34 = vpop.permute.xlu1 %541 }
 0x8ab   :  { %1532 = vmatmul.mubr.msk.f32.vlgmr.msra.gmra.mxu1 %vm224_vm3, %v542_v34 }
 0x8ac   :  { %1535 = vmatpush3.msra.mxu1 %v1926_v3  ;;  %1542 = vmatprep.mubr.msk.f32.mxu1 %vm1820_vm0, %v1819_v1 }
 0x8ad   :  { %1536 = vmatprep.subr.mxu1 %v1819_v1 }
 0x8ae   :  { %1537 = vmatpush3.msra.mxu1 %v1929_v5 }
 0x8af   :  { %1538 = vmatprep.subr.mxu1 %v1819_v1 }
 0x8b0   :  { %1539 = vmatpush3.msra.mxu1 %v1933_v9 }
 0x8b1   :  { %1540 = vmatprep.subr.mxu1 %v1819_v1 }
 0x8b2   :  { %1541 = vmatpush3.msra.mxu1 %v1941_v11 }
 0x8b3   :  { %1556 = vmatprep.subr.mxu1 %v1819_v1 }
 0x96b   :  { %v611_v35 = vpop.f32.mrf.mxu1 }
 0x96c   :  { %v615_v37 = vadd.f32 %v611_v35, %v1978_v36 }
 0x96d   :  { %v1533_v38 = vpop.f32.mrf.mxu1 }
 0x96e   :  { %v1403_v43 = vmul.f32 -1.442695, %v615_v37 }
 0x970   :  { %1647 = vpow2.f32 %v1403_v43 }
 0x97d   :  { %v1648_v44 = vpop.eup %1647 }
 0x97e   :  { %v619_v45 = vadd.f32 1.0, %v1648_v44 }
 0x980   :  { %1649 = vrcp.f32 %v619_v45 }
 0x98d   :  { %v1650_v46 = vpop.eup %1649 }
 0x98e   :  { %v622_v47 = vmul.f32 2.0, %v1650_v46  ;;  %v624_v51 = vmul.f32 %v1650_v46, %v528_v30 }
 0x990   :  { %v1404_v48 = vadd.f32 -1.0, %v622_v47 }
 0x992   :  { %626 = vrot.lane.b32.xlu0 %v1404_v48, %s1821_s3 }
 0xa04   :  { %v627_v49 = vpop.permute.xlu0 %626 }
 0xa05   :  { %v629_v50 = vmul.f32 %v1650_v46, %v627_v49 }
 0xa07   :  { %631 = vrot.lane.b32.xlu1 %v629_v50, %s1822_s24 }
 0xa79   :  { %v632_v52 = vpop.permute.xlu1 %631 }
 0xa7a   :  { %v634_v53 = vadd.f32 %v632_v52, %v624_v51 }
 0xa7c   :  { %1651 = vtanh.f32 %v634_v53 }
 0xa89   :  { %v1652_v36 = vpop.eup %1651 }
 0xa8a   :  { %637 = vrot.lane.b32.xlu0 %v1652_v36, %s1821_s3 }
 0xafc   :  { %v638_v54 = vpop.permute.xlu0 %637 }
 0xafd   :  { %v640_v55 = vmul.f32 %v1650_v46, %v638_v54 }
 0xaff   :  { %647 = vrot.lane.b32.xlu1 %v640_v55, %s1822_s24 }
 0xb71   :  { %v648_v56 = vpop.permute.xlu1 %647 }
 0xb72   :  { %1543 = vmatmul.mubr.msk.f32.vlgmr.msra.gmra.mxu1 %vm224_vm3, %v648_v56 }
 0xb73   :  { %1557 = vmatpush3.msra.mxu1 %v1926_v3  ;;  %1564 = vmatprep.mubr.msk.f32.mxu1 %vm1820_vm0, %v1819_v1 }
 0xb74   :  { %1558 = vmatprep.subr.mxu1 %v1819_v1 }
 0xb75   :  { %1559 = vmatpush3.msra.mxu1 %v1929_v5 }
 0xb76   :  { %1560 = vmatprep.subr.mxu1 %v1819_v1 }
 0xb77   :  { %1561 = vmatpush3.msra.mxu1 %v1933_v9 }
 0xb78   :  { %1562 = vmatprep.subr.mxu1 %v1819_v1 }
 0xb79   :  { %1563 = vmatpush3.msra.mxu1 %v1941_v11 }
 0xc32   :  { %v717_v57 = vpop.f32.mrf.mxu1 }
 0xc33   :  { %v721_v58 = vadd.f32 %v717_v57, %v1981_v39 }
 0xc34   :  { %v1544_v59 = vpop.f32.mrf.mxu1 }
 0xc35   :  { %v1406_v60 = vmul.f32 -1.442695, %v721_v58 }
 0xc37   :  { %1653 = vpow2.f32 %v1406_v60 }
 0xc44   :  { %v1654_v61 = vpop.eup %1653 }
 0xc45   :  { %v725_v62 = vadd.f32 1.0, %v1654_v61 }
 0xc47   :  { %1655 = vrcp.f32 %v725_v62 }
 0xc54   :  { %v1656_v63 = vpop.eup %1655 }
 0xc55   :  { %v728_v0 = vmul.f32 2.0, %v1656_v63  ;;  %v730_v7 = vmul.f32 %v1656_v63, %v634_v53 }
 0xc57   :  { %v1407_v2 = vadd.f32 -1.0, %v728_v0  ;;  %v1078_v0 = vld [vmem:[#allocation10 + $0x30] sm:$0xff] }
 0xc59   :  { %732 = vrot.lane.b32.xlu0 %v1407_v2, %s1821_s3  ;;  %v1077_v2 = vld [vmem:[#allocation10 + $0x28] sm:$0xff] }
 0xccb   :  { %v733_v4 = vpop.permute.xlu0 %732 }
 0xccc   :  { %v735_v6 = vmul.f32 %v1656_v63, %v733_v4  ;;  %v1071_v4 = vld [vmem:[#allocation8 + $0x18] sm:$0xff] }
 0xcce   :  { %737 = vrot.lane.b32.xlu1 %v735_v6, %s1822_s24  ;;  %v1076_v6 = vld [vmem:[#allocation10 + $0x20] sm:$0xff] }
 0xd40   :  { %v738_v8 = vpop.permute.xlu1 %737 }
 0xd41   :  { %v740_v12 = vadd.f32 %v738_v8, %v730_v7  ;;  %v1070_v7 = vld [vmem:[#allocation8 + $0x10] sm:$0xff]  ;;  %v1075_v8 = vld [vmem:[#allocation10 + $0x18] sm:$0xff] }
 0xd43   :  { %1657 = vtanh.f32 %v740_v12 }
 0xd50   :  { %v1658_v39 = vpop.eup %1657 }
 0xd51   :  { %743 = vrot.lane.b32.xlu0 %v1658_v39, %s1821_s3  ;;  %v1074_v39 = vld [vmem:[#allocation10 + $0x10] sm:$0xff] }
 0xdc3   :  { %v744_v13 = vpop.permute.xlu0 %743 }
 0xdc4   :  { %v746_v14 = vmul.f32 %v1656_v63, %v744_v13  ;;  %v1068_v13 = vld [vmem:[#allocation8] sm:$0xff] }
 0xdc6   :  { %753 = vrot.lane.b32.xlu1 %v746_v14, %s1822_s24  ;;  %v1073_v14 = vld [vmem:[#allocation10 + $0x8] sm:$0xff] }
 0xe38   :  { %v754_v15 = vpop.permute.xlu1 %753 }
 0xe39   :  { %1554 = vmatmul.mubr.msk.f32.vlgmr.msra.gmra.mxu0 %vm224_vm3, %v754_v15  ;;  %v1072_v15 = vld [vmem:[#allocation10] sm:$0xff] }
 0xe3a   :  { %1568 = vmatpush3.msra.mxu0 %v1926_v3  ;;  %1575 = vmatprep.mubr.msk.f32.mxu0 %vm1820_vm0, %v1819_v1 }
 0xe3b   :  { %1569 = vmatprep.subr.mxu0 %v1819_v1 }
 0xe3c   :  { %1570 = vmatpush3.msra.mxu0 %v1929_v5 }
 0xe3d   :  { %1571 = vmatprep.subr.mxu0 %v1819_v1 }
 0xe3e   :  { %1572 = vmatpush3.msra.mxu0 %v1933_v9 }
 0xe3f   :  { %1573 = vmatprep.subr.mxu0 %v1819_v1 }
 0xe40   :  { %1574 = vmatpush3.msra.mxu0 %v1941_v11 }
 0xe41   :  { %1187 = vmatprep.subr.mxu0 %v1071_v4 }
 0xef9   :  { %v823_v16 = vpop.f32.mrf.mxu0 }
 0xefa   :  { %v827_v17 = vadd.f32 %v823_v16, %v1984_v40 }
 0xefb   :  { %v1555_v18 = vpop.f32.mrf.mxu0 }
 0xefc   :  { %v1409_v3 = vmul.f32 -1.442695, %v827_v17  ;;  %v1261_v17 = vld [vmem:[#allocation11 + $0x78] sm:$0xff]  ;;  %v1260_v18 = vld [vmem:[#allocation11 + $0x70] sm:$0xff] }
 0xefe   :  { %1659 = vpow2.f32 %v1409_v3  ;;  %v1259_v3 = vld [vmem:[#allocation11 + $0x68] sm:$0xff] }
 0xf0b   :  { %v1660_v19 = vpop.eup %1659 }
 0xf0c   :  { %v831_v20 = vadd.f32 1.0, %v1660_v19  ;;  %v1257_v19 = vld [vmem:[#allocation11 + $0x58] sm:$0xff] }
 0xf0e   :  { %1661 = vrcp.f32 %v831_v20  ;;  %v1256_v20 = vld [vmem:[#allocation11 + $0x50] sm:$0xff] }
 0xf1b   :  { %v1662_v21 = vpop.eup %1661 }
 0xf1c   :  { %v834_v22 = vmul.f32 2.0, %v1662_v21  ;;  %v836_v24 = vmul.f32 %v1662_v21, %v740_v12  ;;  %v1069_v12 = vld [vmem:[#allocation8 + $0x8] sm:$0xff] }
 0xf1e   :  { %v1410_v5 = vadd.f32 -1.0, %v834_v22  ;;  %v1255_v22 = vld [vmem:[#allocation11 + $0x48] sm:$0xff] }
 0xf20   :  { %838 = vrot.lane.b32.xlu0 %v1410_v5, %s1821_s3 }
 0xf92   :  { %v839_v23 = vpop.permute.xlu0 %838 }
 0xf93   :  { %v841_v9 = vmul.f32 %v1662_v21, %v839_v23  ;;  %v1254_v23 = vld [vmem:[#allocation11 + $0x40] sm:$0xff] }
 0xf95   :  { %843 = vrot.lane.b32.xlu1 %v841_v9, %s1822_s24  ;;  %v1253_v9 = vld [vmem:[#allocation11 + $0x38] sm:$0xff] }
0x1007   :  { %v844_v11 = vpop.permute.xlu1 %843 }
0x1008   :  { %v846_v25 = vadd.f32 %v844_v11, %v836_v24  ;;  %v1252_v24 = vld [vmem:[#allocation11 + $0x30] sm:$0xff]  ;;  %v1251_v11 = vld [vmem:[#allocation11 + $0x28] sm:$0xff] }
0x100a   :  { %1663 = vtanh.f32 %v846_v25 }
0x1017   :  { %v1664_v40 = vpop.eup %1663 }
0x1018   :  { %849 = vrot.lane.b32.xlu0 %v1664_v40, %s1821_s3 }
0x108a   :  { %v850_v26 = vpop.permute.xlu0 %849 }
0x108b   :  { %v852_v27 = vmul.f32 %v1662_v21, %v850_v26  ;;  %v1249_v26 = vld [vmem:[#allocation11 + $0x18] sm:$0xff] }
0x108d   :  { %859 = vrot.lane.b32.xlu1 %v852_v27, %s1822_s24  ;;  %v1248_v27 = vld [vmem:[#allocation11 + $0x10] sm:$0xff] }
0x10ff   :  { %v860_v28 = vpop.permute.xlu1 %859 }
0x1100   :  { %1565 = vmatmul.mubr.msk.f32.vlgmr.msra.gmra.mxu1 %vm224_vm3, %v860_v28  ;;  %v1247_v28 = vld [vmem:[#allocation11 + $0x8] sm:$0xff] }
0x1101   :  { %1149 = vmatprep.mubr.f32.mxu1 %v1819_v1 }
0x11c0   :  { %v929_v29 = vpop.f32.mrf.mxu1 }
0x11c1   :  { %v933_v30 = vadd.f32 %v929_v29, %v1987_v41  ;;  %v1246_v29 = vld [vmem:[#allocation11] sm:$0xff] }
0x11c2   :  { %v1566_v31 = vpop.f32.mrf.mxu1 }
0x11c3   :  { %v1412_v32 = vmul.f32 -1.442695, %v933_v30  ;;  %v1232_v30 = vlaneseq }
0x11c5   :  { %1665 = vpow2.f32 %v1412_v32  ;;  %v1233_v31 = vshrl.u32 %v1232_v30, 7 }
0x11c7   :  { %v1234_v32 = vsub.s32 0, %v1233_v31 }
0x11d2   :  { %v1666_v33 = vpop.eup %1665 }
0x11d3   :  { %v937_v34 = vadd.f32 1.0, %v1666_v33  ;;  %v1230_v33 = vld [vmem:[%s2129_s6] sm:$0x3] }
0x11d5   :  { %1667 = vrcp.f32 %v937_v34  ;;  %v1238_v34 = vsub.s32 1, %v1233_v31 }
0x11e2   :  { %v1668_v35 = vpop.eup %1667 }
0x11e3   :  { %v940_v37 = vmul.f32 2.0, %v1668_v35  ;;  %v942_v45 = vmul.f32 %v1668_v35, %v846_v25  ;;  %v1250_v25 = vld [vmem:[#allocation11 + $0x20] sm:$0xff] }
0x11e5   :  { %v1413_v38 = vadd.f32 -1.0, %v940_v37  ;;  %v1235_v37 = vrot.slane %v1230_v33, %v1234_v32 }
0x11e7   :  { %944 = vrot.lane.b32.xlu0 %v1413_v38, %s1821_s3 }
0x1259   :  { %v945_v43 = vpop.permute.xlu0 %944 }
0x125a   :  { %v947_v44 = vmul.f32 %v1668_v35, %v945_v43 }
0x125c   :  { %949 = vrot.lane.b32.xlu1 %v947_v44, %s1822_s24  ;;  %v1239_v44 = vrot.slane %v1230_v33, %v1238_v34 }
0x12ce   :  { %v950_v46 = vpop.permute.xlu1 %949 }
0x12cf   :  { %v952_v47 = vadd.f32 %v950_v46, %v942_v45 }
0x12d1   :  { %1669 = vtanh.f32 %v952_v47 }
0x12de   :  { %v1670_v41 = vpop.eup %1669 }
0x12df   :  { %955 = vrot.lane.b32.xlu0 %v1670_v41, %s1821_s3 }
0x1351   :  { %v956_v48 = vpop.permute.xlu0 %955 }
0x1352   :  { %v958_v49 = vmul.f32 %v1668_v35, %v956_v48 }
0x1354   :  { %965 = vrot.lane.b32.xlu1 %v958_v49, %s1822_s24  ;;  %v1420_v49 = vld [vmem:[%s2132_s9] ss:$0 sm:$0xff] }
0x13c6   :  { %v966_v50 = vpop.permute.xlu1 %965 }
0x13c7   :  { %1576 = vmatmul.mubr.msk.f32.vlgmr.msra.gmra.mxu0 %vm224_vm3, %v966_v50 }
0x13c8   :  { %1223 = vmatprep.mubr.f32.mxu0 %v1819_v1  ;;  %1188 = vmatpush1.msra.mxu0 %v1070_v7 }
0x13c9   :  { %1189 = vmatprep.subr.mxu0 %v1069_v12 }
0x13ca   :  { %1190 = vmatpush1.msra.mxu0 %v1068_v13 }
0x13cb   :  { %1418 = vmatmul.mubr.msk.f32.vlgmr.msra.gmra.mxu0 %vm133_vm1, %v1937_v10  ;;  %1578 = vmatprep.subr.mxu0 %v1819_v1  ;;  %v1258_v10 = vld [vmem:[#allocation11 + $0x60] sm:$0xff] }
0x13cc   :  { %1610 = vmatprep.mubr.msk.f32.mxu0 %vm1820_vm0, %v1819_v1  ;;  %1579 = vmatpush3.msra.mxu0 %v1261_v17 }
0x13cd   :  { %1580 = vmatprep.subr.mxu0 %v1819_v1 }
0x13ce   :  { %1581 = vmatpush3.msra.mxu0 %v1260_v18 }
0x13cf   :  { %1582 = vmatprep.subr.mxu0 %v1819_v1 }
0x13d0   :  { %1583 = vmatpush3.msra.mxu0 %v1259_v3 }
0x13d1   :  { %1584 = vmatprep.subr.mxu0 %v1819_v1 }
0x13d2   :  { %1585 = vmatpush3.msra.mxu0 %v1258_v10 }
0x13d3   :  { %1586 = vmatprep.subr.mxu0 %v1819_v1 }
0x13d4   :  { %1587 = vmatpush3.msra.mxu0 %v1257_v19 }
0x13d5   :  { %1588 = vmatprep.subr.mxu0 %v1819_v1 }
0x13d6   :  { %1589 = vmatpush3.msra.mxu0 %v1256_v20 }
0x13d7   :  { %1590 = vmatprep.subr.mxu0 %v1819_v1 }
0x13d8   :  { %1591 = vmatpush3.msra.mxu0 %v1255_v22 }
0x13d9   :  { %1592 = vmatprep.subr.mxu0 %v1819_v1 }
0x13da   :  { %1593 = vmatpush3.msra.mxu0 %v1254_v23 }
0x13db   :  { %1594 = vmatprep.subr.mxu0 %v1819_v1 }
0x13dc   :  { %1595 = vmatpush3.msra.mxu0 %v1253_v9 }
0x13dd   :  { %1596 = vmatprep.subr.mxu0 %v1819_v1 }
0x13de   :  { %1597 = vmatpush3.msra.mxu0 %v1252_v24 }
0x13df   :  { %1598 = vmatprep.subr.mxu0 %v1819_v1 }
0x13e0   :  { %1599 = vmatpush3.msra.mxu0 %v1251_v11 }
0x13e1   :  { %1600 = vmatprep.subr.mxu0 %v1819_v1 }
0x13e2   :  { %1601 = vmatpush3.msra.mxu0 %v1250_v25 }
0x13e3   :  { %1602 = vmatprep.subr.mxu0 %v1819_v1 }
0x13e4   :  { %1603 = vmatpush3.msra.mxu0 %v1249_v26 }
0x13e5   :  { %1604 = vmatprep.subr.mxu0 %v1819_v1 }
0x13e6   :  { %1605 = vmatpush3.msra.mxu0 %v1248_v27 }
0x13e7   :  { %1606 = vmatprep.subr.mxu0 %v1819_v1 }
0x13e8   :  { %1607 = vmatpush3.msra.mxu0 %v1247_v28 }
0x13e9   :  { %1608 = vmatprep.subr.mxu0 %v1819_v1 }
0x13ea   :  { %1609 = vmatpush3.msra.mxu0 %v1246_v29 }
0x1487   :  { %v1035_v51 = vpop.f32.mrf.mxu0 }
0x1488   :  { %v1039_v52 = vadd.f32 %v1035_v51, %v1990_v42  ;;  %v1079_v42 = vld [vmem:[#allocation10 + $0x38] sm:$0xff] }
0x1489   :  { %v1577_v53 = vpop.f32.mrf.mxu0  ;;  %1109 = vmatprep.subr.mxu1 %v1079_v42 }
0x148a   :  { %v1415_v36 = vmul.f32 -1.442695, %v1039_v52  ;;  %1110 = vmatpush1.msra.mxu1 %v1078_v0  ;;  %v1360_v53 = vand.u32 127, %v1232_v30  ;;  %v1421_v0 = vld [vmem:[#allocation2] ss:$0 sm:$0xff] }
0x148b   :  { %1111 = vmatprep.subr.mxu1 %v1077_v2  ;;  %v1225_v35 = vpop.f32.mrf.mxu0 }
0x148c   :  { %1671 = vpow2.f32 %v1415_v36  ;;  %1112 = vmatpush1.msra.mxu1 %v1076_v6  ;;  %v1419_v36 = vld [vmem:[%s2131_s8] ss:$0 sm:$0xff]  ;;  %vm1361_vm5 = vcmp.lt.s32.totalorder %v1360_v53, 81  ;;  %vm1374_vm6 = vcmp.eq.s32.totalorder %v1360_v53, 81 }
0x148d   :  { %1113 = vmatprep.subr.mxu1 %v1075_v8  ;;  %v1227_v45 = vpop.f32.mrf.mxu0 }
0x148e   :  { %1114 = vmatpush1.msra.mxu1 %v1074_v39 }
0x148f   :  { %1115 = vmatprep.subr.mxu1 %v1073_v14 }
0x1490   :  { %1116 = vmatpush1.msra.mxu1 %v1072_v15 }
0x1499   :  { %v1672_v54 = vpop.eup %1671 }
0x149a   :  { %v1043_v55 = vadd.f32 1.0, %v1672_v54 }
0x149c   :  { %1673 = vrcp.f32 %v1043_v55 }
0x14a9   :  { %v1674_v56 = vpop.eup %1673 }
0x14aa   :  { %v1046_v57 = vmul.f32 2.0, %v1674_v56  ;;  %v1048_v61 = vmul.f32 %v1674_v56, %v952_v47 }
0x14ac   :  { %v1416_v58 = vadd.f32 -1.0, %v1046_v57 }
0x14ae   :  { %1050 = vrot.lane.b32.xlu0 %v1416_v58, %s1821_s3 }
0x1520   :  { %v1051_v59 = vpop.permute.xlu0 %1050 }
0x1521   :  { %v1053_v60 = vmul.f32 %v1674_v56, %v1051_v59  ;;  %v1823_v59 = vmov 0  }
0x1522   :  { %1628 = vset.pattern.permute.xlu0 %v1823_v59 }
0x1523   :  { %1055 = vrot.lane.b32.xlu1 %v1053_v60, %s1822_s24 }
0x1595   :  { %v1056_v62 = vpop.permute.xlu1 %1055 }
0x1596   :  { %v1058_v63 = vadd.f32 %v1056_v62, %v1048_v61 }
0x1598   :  { %1675 = vtanh.f32 %v1058_v63 }
0x15a5   :  { %v1676_v16 = vpop.eup %1675 }
0x15a6   :  { %1061 = vrot.lane.b32.xlu0 %v1676_v16, %s1821_s3 }
0x1618   :  { %v1062_v21 = vpop.permute.xlu0 %1061 }
0x1619   :  { %v1064_v5 = vmul.f32 %v1674_v56, %v1062_v21 }
0x161b   :  { %1081 = vrot.lane.b32.xlu1 %v1064_v5, %s1822_s24 }
0x168d   :  { %v1082_v40 = vpop.permute.xlu1 %1081 }
0x168e   :  { %1417 = vmatmul.mubr.msk.f32.vlgmr.msra.gmra.mxu1 %vm224_vm3, %v1082_v40 }
0x174e   :  { %v1151_v38 = vpop.f32.mrf.mxu1 }
0x174f   :  { %v1226_v43 = vadd.f32 %v1225_v35, %v1151_v38 }
0x1750   :  { %v1153_v46 = vpop.f32.mrf.mxu1 }
0x1751   :  { %v1242_v47 = vadd.f32 %v1235_v37, %v1226_v43  ;;  %v1228_v41 = vadd.f32 %v1227_v45, %v1153_v46 }
0x1753   :  { %v1244_v1 = vmax.f32 %v1242_v47, 0.0  ;;  %v1243_v48 = vadd.f32 %v1239_v44, %v1228_v41 }
0x1755   :  { %v1245_v50 = vmax.f32 %v1243_v48, 0.0  ;;  %1611 = vmatmul.mubr.f32.vlgmr.msra.gmra.mxu0 %v1244_v1 }
0x1757   :  { %v1346_v51 = vmul.f32 %v1420_v49, %v1245_v50 }
0x1759   :  { %v1348_v52 = vsel %vm1347_vm4, %v1346_v51, 0.0 }
0x175a   :  { %1349 = vadd.xlane.f32.xlu1 %v1348_v52 }
0x17e3   :  { %v1350_v2 = vpop.xlane.xlu1 %1349 }
0x17e4   :  { %v1358_v4 = vadd.f32 %v1421_v0, %v1350_v2 }
0x1815   :  { %v1335_v54 = vpop.f32.mrf.mxu0 }
0x1816   :  { %v1336_v55 = vadd.f32 %v1419_v36, %v1335_v54 }
0x1817   :  { %v1612_v56 = vpop.f32.mrf.mxu0 }
0x1818   :  { %v1362_v57 = vsel %vm1361_vm5, %v1336_v55, -inf }
0x1819   :  { %v1363_v58 = vsel %vm1347_vm4, %v1362_v57, -inf }
0x181a   :  { %1364 = vmax.xlane.f32.xlu0 %v1363_v58 }
0x18a3   :  { %v1365_v60 = vpop.xlane.xlu0 %1364 }
0x18a4   :  { %v1366_v61 = vsub.f32 %v1362_v57, %v1365_v60 }
0x18a6   :  { %v1367_v62 = vmul.f32 1.442695, %v1366_v61 }
0x18a8   :  { %1677 = vpow2.f32 %v1367_v62 }
0x18b5   :  { %v1678_v63 = vpop.eup %1677 }
0x18b6   :  { %v1369_v42 = vsel %vm1347_vm4, %v1678_v63, 0.0 }
0x18b7   :  { %1370 = vadd.xlane.f32.xlu0 %v1369_v42 }
0x18cd   :  { %1377 = vperm.xlu0 %1628, %v1358_v4  }
0x1940   :  { %v1371_v6 = vpop.xlane.xlu0 %1370 }
0x1941   :  { %1679 = vrcp.f32 %v1371_v6 }
0x1948   :  { %v1378_v7 = vpop.permute.xlu0 %1377 }
0x1949   :  { %v1380_v39 = vsel %vm1374_vm6, %v1378_v7, 0.0 }
0x194e   :  { %v1680_v8 = vpop.eup %1679 }
0x194f   :  { %v1373_v12 = vmul.f32 %v1680_v8, %v1678_v63 }
0x1951   :  { %v1381_v13 = vadd.f32 %v1380_v39, %v1373_v12 }
0x1953   :  { %1382 = vst [vmem:[%s2134_s11] sm:$0x3] %v1381_v13 }
0x1954   :  { %1387 = vsyncpa [#allocation4], 1 }
0x1955   :  { %1388 = vsyncpa [#allocation6], 1 }
0x1956   :  { %1389 = vsyncpa [#allocation9], 1 }
0x1957   :  { %1390 = vsyncpa [#allocation12], 1 }

</bundles_post_ra>
